<compile_context>
chip_gen: v6e
topology: v6e:2x2x1
jax: 0.10.0
libtpu: 0.0.40
codegen_flags: <defaults>
</compile_context>

<pallas_src>
from functools import partial

import jax
import jax.numpy as jnp
from jax.experimental import pallas as pl
from jax.experimental.pallas import tpu as pltpu

EPS = 1e-5  # nn.LayerNorm default eps


def _predictor_kernel(x_ref, w1_ref, b1_ref, g1_ref, be1_ref,
                      w2_ref, b2_ref, g2_ref, be2_ref,
                      wl_ref, bl_ref, out_ref, h_ref, *, Tt, H):
    Bb, T, E = x_ref.shape
    K = w1_ref.shape[0]
    Hp = w1_ref.shape[2]
    nt = T // Tt          # time tiles per block (static)
    M = Bb * Tt           # MXU M dimension per tile (batch x time rows, flattened)
    inv_h = 1.0 / H

    # Row position within a time tile, repeated per batch element of the flattened
    # (M, C) slabs; used to zero conv taps that fall outside [0, T).
    rowpos = jax.lax.broadcasted_iota(jnp.int32, (M, 1), 0) % Tt

    def _mask_edge(v, d):
        # Zero the rows whose source time index t + d falls outside the sequence.
        if d < 0:
            return jnp.where(rowpos >= -d, v, jnp.zeros_like(v))
        return jnp.where(rowpos < Tt - d, v, jnp.zeros_like(v))

    def _tap_value(v, d):
        # v: (M, C) value holding the whole sequence of this batch block (nt == 1).
        if d == 0:
            return v
        return _mask_edge(pltpu.roll(v, (-d) % M, 0), d)

    def _tap_ref(src_ref, t0, d, first, last):
        # (M, C) slab of src[b, t0 + t + d, :] with zeros outside [0, T).
        cin = src_ref.shape[2]
        if d == 0:
            return src_ref[:, pl.ds(t0, Tt), :].reshape(M, cin)
        if (first and d < 0) or (last and d > 0):
            start = 0 if d < 0 else T - Tt                       # clamped in-bounds read,
            v = src_ref[:, pl.ds(start, Tt), :].reshape(M, cin)  # realigned + masked below
            return _mask_edge(pltpu.roll(v, (-d) % M, 0), d)
        return src_ref[:, pl.ds(t0 + d, Tt), :].reshape(M, cin)

    def conv_ln_relu(get_tap, w_ref, b_ref, g_ref, be_ref):
        # Conv1d(kernel K, padding 1) as K shifted (M, Cin) @ (Cin, Hp) MXU matmuls.
        acc = None
        for k in range(K):
            part = jnp.dot(get_tap(k - 1), w_ref[k],
                           preferred_element_type=jnp.float32)
            acc = part if acc is None else acc + part
        acc = acc + b_ref[...]
        # LayerNorm over the true H channels (padded lanes are exactly zero, so sums
        # over Hp equal sums over H; E[x^2] - mu^2 avoids masking the pad lanes).
        mu = jnp.sum(acc, axis=-1, keepdims=True) * inv_h
        ms = jnp.sum(acc * acc, axis=-1, keepdims=True) * inv_h
        nrm = (acc - mu) * jax.lax.rsqrt(ms - mu * mu + EPS)
        return jnp.maximum(nrm * g_ref[...] + be_ref[...], 0.0)   # ReLU (dropout = id)

    def project_store(h2, t0):
        # Linear(H -> 1) + ReLU as a VPU multiply + cross-lane reduce: keeps the
        # degenerate N=1 matmul off the MXU and the output store lane-dense along T.
        prod = (h2 * wl_ref[...]).reshape(Bb, Tt, Hp)
        y = jnp.sum(prod, axis=-1) + bl_ref[...]
        out_ref[:, 0, pl.ds(t0, Tt)] = jnp.maximum(y, 0.0)

    if nt == 1:
        # Short sequences: fully fused, no VMEM round trip for the hidden activation.
        xv = x_ref[...].reshape(M, E)
        h = conv_ln_relu(lambda d: _tap_value(xv, d),
                         w1_ref, b1_ref, g1_ref, be1_ref).astype(h_ref.dtype)
        h2 = conv_ln_relu(lambda d: _tap_value(h, d),
                          w2_ref, b2_ref, g2_ref, be2_ref)
        project_store(h2, 0)
    else:
        # Long sequences: two tiled passes; the hidden activation is staged in VMEM
        # with tile-aligned stores (no offset-1 store, no full-buffer zero fill).
        def stage1(t0, first, last):
            h = conv_ln_relu(lambda d: _tap_ref(x_ref, t0, d, first, last),
                             w1_ref, b1_ref, g1_ref, be1_ref)
            h_ref[:, pl.ds(t0, Tt), :] = h.reshape(Bb, Tt, Hp).astype(h_ref.dtype)

        def stage2(t0, first, last):
            h2 = conv_ln_relu(lambda d: _tap_ref(h_ref, t0, d, first, last),
                              w2_ref, b2_ref, g2_ref, be2_ref)
            project_store(h2, t0)

        def sweep(tile_fn):
            tile_fn(0, True, False)                       # peeled first tile
            if nt > 2:
                def body(j, carry):
                    tile_fn(pl.multiple_of(j * Tt, Tt), False, False)
                    return carry
                jax.lax.fori_loop(1, nt - 1, body, 0)     # interior tiles
            tile_fn(T - Tt, False, True)                  # peeled last tile

        sweep(stage1)
        sweep(stage2)


def base_predictor(x, params, *, time_tile=None, compute_dtype=None):
    """x: (B, T, E) float. params from init_params (conv weights as (K, C_in, C_out)).
    Returns (B, T) float32, matching BasePredictor.forward in eval mode."""
    (w1, b1, g1, be1, w2, b2, g2, be2, wl, bl) = params
    B, T, E = x.shape
    K, _, H = w1.shape
    # nn.Conv1d(..., padding=1) preserves the time length only for kernel_size=3,
    # which is what the stacked blocks of the reference module rely on.
    assert K == 3, "BasePredictor uses padding=1; kernel_size must be 3"

    Hp = ((H + 127) // 128) * 128     # hidden channels padded to the 128-lane width
    cdt = jnp.dtype(compute_dtype) if compute_dtype is not None else x.dtype

    # ---- tile selection -------------------------------------------------------
    if time_tile is not None:
        Tt = int(time_tile)
        assert 0 < Tt <= T and T % Tt == 0
    else:
        Tt = T
        if T > 256:                     # bound per-tile vreg pressure
            for cand in range(256, 7, -8):
                if T % cand == 0:
                    Tt = cand
                    break
    Bb = 1                              # batch elements per grid step: top up the MXU
    for cand in range(2, B + 1):        # M dimension when sequences are short
        if B % cand == 0 and cand * Tt <= 256:
            Bb = cand
    nb = B // Bb
    nt = T // Tt

    # ---- parameter layout: pad hidden channels to Hp with zeros (zero gamma/beta
    # pads keep padded lanes exactly zero through LayerNorm/ReLU); matmul operands
    # are cast to compute_dtype (e.g. bf16 for the v6e/v7x MXU), LayerNorm params
    # and biases stay float32. --------------------------------------------------
    def pad_to(a, axis):
        pad = [(0, 0)] * a.ndim
        pad[axis] = (0, Hp - a.shape[axis])
        return jnp.pad(a, pad)

    w1p = pad_to(w1, 2).astype(cdt)                         # (K, E, Hp)
    w2p = pad_to(pad_to(w2, 2), 1).astype(cdt)              # (K, Hp, Hp)
    wlp = pad_to(wl.reshape(1, H), 1).astype(cdt)           # (1, Hp)
    b1p, g1p, be1p = [pad_to(a, 1).astype(jnp.float32) for a in (b1, g1, be1)]
    b2p, g2p, be2p = [pad_to(a, 1).astype(jnp.float32) for a in (b2, g2, be2)]
    blp = bl.reshape(1, 1).astype(jnp.float32)

    vec_spec = pl.BlockSpec((1, Hp), lambda b: (0, 0))
    h_scratch = (Bb, T, Hp) if nt > 1 else (8, 128)         # unused when fully fused

    out = pl.pallas_call(
        partial(_predictor_kernel, Tt=Tt, H=H),
        out_shape=jax.ShapeDtypeStruct((B, 1, T), jnp.float32),
        grid_spec=pltpu.PrefetchScalarGridSpec(
            num_scalar_prefetch=0,
            grid=(nb,),
            in_specs=[
                pl.BlockSpec((Bb, T, E), lambda b: (b, 0, 0)),     # x
                pl.BlockSpec((K, E, Hp), lambda b: (0, 0, 0)),     # conv1 weight
                vec_spec, vec_spec, vec_spec,                      # conv1 b, ln1 g, ln1 b
                pl.BlockSpec((K, Hp, Hp), lambda b: (0, 0, 0)),    # conv2 weight
                vec_spec, vec_spec, vec_spec,                      # conv2 b, ln2 g, ln2 b
                vec_spec,                                          # linear weight (row)
                pl.BlockSpec((1, 1), lambda b: (0, 0)),            # linear bias
            ],
            out_specs=pl.BlockSpec((Bb, 1, T), lambda b: (b, 0, 0)),
            scratch_shapes=[pltpu.VMEM(h_scratch, cdt)],
        ),
        compiler_params=pltpu.CompilerParams(
            dimension_semantics=("parallel",),      # batch blocks are independent
            vmem_limit_bytes=48 * 1024 * 1024,      # explicit budget (fits v7x 64 MiB)
        ),
    )(x.astype(cdt), w1p, b1p, g1p, be1p, w2p, b2p, g2p, be2p, wlp, blp)
    return out[:, 0, :]   # (B, T); .squeeze(-1) of the PyTorch module


def reference(x, params):
    """Pure-JAX reference mirroring the PyTorch forward (eval mode), float32."""
    (w1, b1, g1, be1, w2, b2, g2, be2, wl, bl) = params

    def block(h, w, b, g, be):
        B, T, _ = h.shape
        K = w.shape[0]
        hp = jnp.pad(h, ((0, 0), (1, 1), (0, 0)))
        o = sum(jnp.einsum("btc,ch->bth", hp[:, k:k + T, :], w[k]) for k in range(K)) + b
        mu = o.mean(-1, keepdims=True)
        var = ((o - mu) ** 2).mean(-1, keepdims=True)
        o = (o - mu) / jnp.sqrt(var + EPS) * g + be
        return jnp.maximum(o, 0.0)

    h = block(x, w1, b1, g1, be1)
    h = block(h, w2, b2, g2, be2)
    y = jnp.maximum(h @ wl + bl, 0.0)
    return y[..., 0]


def init_params(key, embed_dim, hidden_dim, kernel_size):
    ks = jax.random.split(key, 10)
    s = 0.1
    # Conv1d weights stored as (K, C_in, C_out) so the kernel computes x_shift @ w[k];
    # this is PyTorch's conv.weight (C_out, C_in, K) transposed to (K, C_in, C_out).
    w1 = s * jax.random.normal(ks[0], (kernel_size, embed_dim, hidden_dim), jnp.float32)
    b1 = s * jax.random.normal(ks[1], (1, hidden_dim), jnp.float32)
    g1 = 1.0 + s * jax.random.normal(ks[2], (1, hidden_dim), jnp.float32)
    be1 = s * jax.random.normal(ks[3], (1, hidden_dim), jnp.float32)
    w2 = s * jax.random.normal(ks[4], (kernel_size, hidden_dim, hidden_dim), jnp.float32)
    b2 = s * jax.random.normal(ks[5], (1, hidden_dim), jnp.float32)
    g2 = 1.0 + s * jax.random.normal(ks[6], (1, hidden_dim), jnp.float32)
    be2 = s * jax.random.normal(ks[7], (1, hidden_dim), jnp.float32)
    wl = s * jax.random.normal(ks[8], (hidden_dim, 1), jnp.float32)
    bl = s * jax.random.normal(ks[9], (1, 1), jnp.float32)
    return (w1, b1, g1, be1, w2, b2, g2, be2, wl, bl)


if __name__ == "__main__":
    key = jax.random.PRNGKey(0)

    # (B, T, E, H, time_tile, compute_dtype, tol)
    configs = [
        (2, 8, 32, 32, None, None, 1e-4),            # spec-sized toy config, fused path
        (2, 768, 32, 32, None, None, 1e-4),          # time-tiled path (Tt=256), grid of 2
        (2, 8, 32, 32, None, jnp.bfloat16, 1e-1),    # bf16 MXU operands (v6e/v7x)
    ]
    for i, (B, T, E, H, tt, cdt, tol) in enumerate(configs):
        kx, kp = jax.random.split(jax.random.fold_in(key, i))
        x = jax.random.normal(kx, (B, T, E), jnp.float32)
        params = init_params(kp, E, H, 3)
        out = jax.block_until_ready(
            base_predictor(x, params, time_tile=tt, compute_dtype=cdt))
        ref = reference(x, params)
        assert out.shape == (B, T), (out.shape, (B, T))
        err = float(jnp.max(jnp.abs(out - ref)))
        assert jnp.allclose(out, ref, atol=tol, rtol=tol), (i, err)
    print("KERNEL_OK")
</pallas_src>

<mosaic_0001>
module attributes {stable_mosaic.version = 11 : i64} {
  func.func @_predictor_kernel(%arg0: i32, %arg1: memref<2x8x32xf32, #tpu.memory_space<vmem>>, %arg2: memref<3x32x128xf32, #tpu.memory_space<vmem>>, %arg3: memref<1x128xf32, #tpu.memory_space<vmem>>, %arg4: memref<1x128xf32, #tpu.memory_space<vmem>>, %arg5: memref<1x128xf32, #tpu.memory_space<vmem>>, %arg6: memref<3x128x128xf32, #tpu.memory_space<vmem>>, %arg7: memref<1x128xf32, #tpu.memory_space<vmem>>, %arg8: memref<1x128xf32, #tpu.memory_space<vmem>>, %arg9: memref<1x128xf32, #tpu.memory_space<vmem>>, %arg10: memref<1x128xf32, #tpu.memory_space<vmem>>, %arg11: memref<1x1xf32, #tpu.memory_space<vmem>>, %arg12: memref<2x1x8xf32, #tpu.memory_space<vmem>>, %arg13: memref<8x128xf32, #tpu.memory_space<vmem>>) attributes {dimension_semantics = [#tpu.dimension_semantics<parallel>], iteration_bounds = array<i64: 1>, scalar_prefetch = 0 : i64, scratch_operands = 1 : i64, tpu.core_type = #tpu.core_type<tc>, window_params = [{transform_indices = @transform_0, window_bounds = array<i64: 2, 8, 32>}, {pipeline_mode = #tpu.pipeline_mode<synchronous>, transform_indices = @transform_1, window_bounds = array<i64: 3, 32, 128>}, {pipeline_mode = #tpu.pipeline_mode<synchronous>, transform_indices = @transform_2, window_bounds = array<i64: 1, 128>}, {pipeline_mode = #tpu.pipeline_mode<synchronous>, transform_indices = @transform_3, window_bounds = array<i64: 1, 128>}, {pipeline_mode = #tpu.pipeline_mode<synchronous>, transform_indices = @transform_4, window_bounds = array<i64: 1, 128>}, {pipeline_mode = #tpu.pipeline_mode<synchronous>, transform_indices = @transform_5, window_bounds = array<i64: 3, 128, 128>}, {pipeline_mode = #tpu.pipeline_mode<synchronous>, transform_indices = @transform_6, window_bounds = array<i64: 1, 128>}, {pipeline_mode = #tpu.pipeline_mode<synchronous>, transform_indices = @transform_7, window_bounds = array<i64: 1, 128>}, {pipeline_mode = #tpu.pipeline_mode<synchronous>, transform_indices = @transform_8, window_bounds = array<i64: 1, 128>}, {pipeline_mode = #tpu.pipeline_mode<synchronous>, transform_indices = @transform_9, window_bounds = array<i64: 1, 128>}, {pipeline_mode = #tpu.pipeline_mode<synchronous>, transform_indices = @transform_10, window_bounds = array<i64: 1, 1>}, {transform_indices = @transform_11, window_bounds = array<i64: 2, 1, 8>}]} {
    %0 = tpu.iota {dimensions = array<i32: 0>} : vector<16x1xi32>
    %c8_i32 = arith.constant 8 : i32
    %c0_i32 = arith.constant 0 : i32
    %1 = arith.cmpi eq, %c8_i32, %c0_i32 : i32
    %c1_i32 = arith.constant 1 : i32
    %2 = arith.select %1, %c1_i32, %c8_i32 : i32
    %3 = vector.broadcast %2 : i32 to vector<16x1xi32>
    %4 = arith.remsi %0, %3 : vector<16x1xi32>
    %c0_i32_0 = arith.constant 0 : i32
    %5 = vector.broadcast %c0_i32_0 : i32 to vector<16x1xi32>
    %6 = arith.cmpi ne, %4, %5 : vector<16x1xi32>
    %c0_i32_1 = arith.constant 0 : i32
    %7 = vector.broadcast %c0_i32_1 : i32 to vector<16x1xi32>
    %8 = arith.cmpi slt, %4, %7 : vector<16x1xi32>
    %c0_i32_2 = arith.constant 0 : i32
    %9 = arith.cmpi slt, %2, %c0_i32_2 : i32
    %10 = vector.broadcast %9 : i1 to vector<16x1xi1>
    %11 = vector.broadcast %10 : vector<16x1xi1> to vector<16x1xi1>
    %12 = arith.xori %8, %11 : vector<16x1xi1>
    %13 = arith.andi %12, %6 : vector<16x1xi1>
    %14 = vector.broadcast %2 : i32 to vector<16x1xi32>
    %15 = arith.addi %4, %14 : vector<16x1xi32>
    %16 = arith.select %13, %15, %4 : vector<16x1xi1>, vector<16x1xi32>
    %c0 = arith.constant 0 : index
    %c0_3 = arith.constant 0 : index
    %c0_4 = arith.constant 0 : index
    %17 = vector.load %arg1[%c0, %c0_3, %c0_4] : memref<2x8x32xf32, #tpu.memory_space<vmem>>, vector<2x8x32xf32>
    %18 = vector.shape_cast %17 : vector<2x8x32xf32> to vector<16x32xf32>
    %c1_i32_5 = arith.constant 1 : i32
    %19 = tpu.dynamic_rotate %18 by %c1_i32_5 dim 0 : vector<16x32xf32>, i32 -> vector<16x32xf32>
    %c1_i32_6 = arith.constant 1 : i32
    %20 = vector.broadcast %c1_i32_6 : i32 to vector<16x1xi32>
    %21 = arith.cmpi sge, %16, %20 : vector<16x1xi32>
    %cst = arith.constant 0.000000e+00 : f32
    %22 = vector.broadcast %cst : f32 to vector<16x32xf32>
    %23 = vector.shape_cast %21 : vector<16x1xi1> to vector<16x1xi1>
    %24 = vector.broadcast %23 : vector<16x1xi1> to vector<16x32xi1>
    %25 = arith.select %24, %19, %22 : vector<16x32xi1>, vector<16x32xf32>
    %c0_7 = arith.constant 0 : index
    %c0_8 = arith.constant 0 : index
    %c0_9 = arith.constant 0 : index
    %26 = vector.load %arg2[%c0_7, %c0_8, %c0_9] : memref<3x32x128xf32, #tpu.memory_space<vmem>>, vector<1x32x128xf32>
    %27 = vector.shape_cast %26 : vector<1x32x128xf32> to vector<32x128xf32>
    %cst_10 = arith.constant dense<0.000000e+00> : vector<16x128xf32>
    %28 = tpu.matmul %25, %27, %cst_10 {dimension_numbers = #tpu.dot_dimension_numbers<[1], [0], [0], [1], [0, 0, 1, 1], [], []>} : vector<16x32xf32>, vector<32x128xf32>, vector<16x128xf32> -> vector<16x128xf32>
    %c1 = arith.constant 1 : index
    %c0_11 = arith.constant 0 : index
    %c0_12 = arith.constant 0 : index
    %29 = vector.load %arg2[%c1, %c0_11, %c0_12] : memref<3x32x128xf32, #tpu.memory_space<vmem>>, vector<1x32x128xf32>
    %30 = vector.shape_cast %29 : vector<1x32x128xf32> to vector<32x128xf32>
    %cst_13 = arith.constant dense<0.000000e+00> : vector<16x128xf32>
    %31 = tpu.matmul %18, %30, %cst_13 {dimension_numbers = #tpu.dot_dimension_numbers<[1], [0], [0], [1], [0, 0, 1, 1], [], []>} : vector<16x32xf32>, vector<32x128xf32>, vector<16x128xf32> -> vector<16x128xf32>
    %32 = arith.addf %28, %31 : vector<16x128xf32>
    %c15_i32 = arith.constant 15 : i32
    %33 = tpu.dynamic_rotate %18 by %c15_i32 dim 0 : vector<16x32xf32>, i32 -> vector<16x32xf32>
    %c7_i32 = arith.constant 7 : i32
    %34 = vector.broadcast %c7_i32 : i32 to vector<16x1xi32>
    %35 = arith.cmpi slt, %16, %34 : vector<16x1xi32>
    %cst_14 = arith.constant 0.000000e+00 : f32
    %36 = vector.broadcast %cst_14 : f32 to vector<16x32xf32>
    %37 = vector.shape_cast %35 : vector<16x1xi1> to vector<16x1xi1>
    %38 = vector.broadcast %37 : vector<16x1xi1> to vector<16x32xi1>
    %39 = arith.select %38, %33, %36 : vector<16x32xi1>, vector<16x32xf32>
    %c2 = arith.constant 2 : index
    %c0_15 = arith.constant 0 : index
    %c0_16 = arith.constant 0 : index
    %40 = vector.load %arg2[%c2, %c0_15, %c0_16] : memref<3x32x128xf32, #tpu.memory_space<vmem>>, vector<1x32x128xf32>
    %41 = vector.shape_cast %40 : vector<1x32x128xf32> to vector<32x128xf32>
    %cst_17 = arith.constant dense<0.000000e+00> : vector<16x128xf32>
    %42 = tpu.matmul %39, %41, %cst_17 {dimension_numbers = #tpu.dot_dimension_numbers<[1], [0], [0], [1], [0, 0, 1, 1], [], []>} : vector<16x32xf32>, vector<32x128xf32>, vector<16x128xf32> -> vector<16x128xf32>
    %43 = arith.addf %32, %42 : vector<16x128xf32>
    %c0_18 = arith.constant 0 : index
    %c0_19 = arith.constant 0 : index
    %44 = vector.load %arg3[%c0_18, %c0_19] : memref<1x128xf32, #tpu.memory_space<vmem>>, vector<1x128xf32>
    %45 = vector.broadcast %44 : vector<1x128xf32> to vector<16x128xf32>
    %46 = arith.addf %43, %45 : vector<16x128xf32>
    %cst_20 = arith.constant dense<0.000000e+00> : vector<16xf32>
    %47 = vector.multi_reduction <add>, %46, %cst_20 [1] : vector<16x128xf32> to vector<16xf32>
    %48 = vector.shape_cast %47 : vector<16xf32> to vector<16x1xf32>
    %cst_21 = arith.constant 3.125000e-02 : f32
    %49 = vector.broadcast %cst_21 : f32 to vector<16x1xf32>
    %50 = arith.mulf %48, %49 : vector<16x1xf32>
    %51 = arith.mulf %46, %46 : vector<16x128xf32>
    %cst_22 = arith.constant dense<0.000000e+00> : vector<16xf32>
    %52 = vector.multi_reduction <add>, %51, %cst_22 [1] : vector<16x128xf32> to vector<16xf32>
    %53 = vector.shape_cast %52 : vector<16xf32> to vector<16x1xf32>
    %cst_23 = arith.constant 3.125000e-02 : f32
    %54 = vector.broadcast %cst_23 : f32 to vector<16x1xf32>
    %55 = arith.mulf %53, %54 : vector<16x1xf32>
    %56 = vector.broadcast %50 : vector<16x1xf32> to vector<16x128xf32>
    %57 = arith.subf %46, %56 : vector<16x128xf32>
    %58 = arith.mulf %50, %50 : vector<16x1xf32>
    %59 = arith.subf %55, %58 : vector<16x1xf32>
    %cst_24 = arith.constant 9.99999974E-6 : f32
    %60 = vector.broadcast %cst_24 : f32 to vector<16x1xf32>
    %61 = arith.addf %59, %60 : vector<16x1xf32>
    %62 = math.rsqrt %61 : vector<16x1xf32>
    %63 = vector.broadcast %62 : vector<16x1xf32> to vector<16x128xf32>
    %64 = arith.mulf %57, %63 : vector<16x128xf32>
    %c0_25 = arith.constant 0 : index
    %c0_26 = arith.constant 0 : index
    %65 = vector.load %arg4[%c0_25, %c0_26] : memref<1x128xf32, #tpu.memory_space<vmem>>, vector<1x128xf32>
    %66 = vector.broadcast %65 : vector<1x128xf32> to vector<16x128xf32>
    %67 = arith.mulf %64, %66 : vector<16x128xf32>
    %c0_27 = arith.constant 0 : index
    %c0_28 = arith.constant 0 : index
    %68 = vector.load %arg5[%c0_27, %c0_28] : memref<1x128xf32, #tpu.memory_space<vmem>>, vector<1x128xf32>
    %69 = vector.broadcast %68 : vector<1x128xf32> to vector<16x128xf32>
    %70 = arith.addf %67, %69 : vector<16x128xf32>
    %cst_29 = arith.constant 0.000000e+00 : f32
    %71 = vector.broadcast %cst_29 : f32 to vector<16x128xf32>
    %72 = arith.maximumf %70, %71 : vector<16x128xf32>
    %c1_i32_30 = arith.constant 1 : i32
    %73 = tpu.dynamic_rotate %72 by %c1_i32_30 dim 0 : vector<16x128xf32>, i32 -> vector<16x128xf32>
    %c1_i32_31 = arith.constant 1 : i32
    %74 = vector.broadcast %c1_i32_31 : i32 to vector<16x1xi32>
    %75 = arith.cmpi sge, %16, %74 : vector<16x1xi32>
    %cst_32 = arith.constant 0.000000e+00 : f32
    %76 = vector.broadcast %cst_32 : f32 to vector<16x128xf32>
    %77 = vector.shape_cast %75 : vector<16x1xi1> to vector<16x1xi1>
    %78 = vector.broadcast %77 : vector<16x1xi1> to vector<16x128xi1>
    %79 = arith.select %78, %73, %76 : vector<16x128xi1>, vector<16x128xf32>
    %c0_33 = arith.constant 0 : index
    %c0_34 = arith.constant 0 : index
    %c0_35 = arith.constant 0 : index
    %80 = vector.load %arg6[%c0_33, %c0_34, %c0_35] : memref<3x128x128xf32, #tpu.memory_space<vmem>>, vector<1x128x128xf32>
    %81 = vector.shape_cast %80 : vector<1x128x128xf32> to vector<128x128xf32>
    %cst_36 = arith.constant dense<0.000000e+00> : vector<16x128xf32>
    %82 = tpu.matmul %79, %81, %cst_36 {dimension_numbers = #tpu.dot_dimension_numbers<[1], [0], [0], [1], [0, 0, 1, 1], [], []>} : vector<16x128xf32>, vector<128x128xf32>, vector<16x128xf32> -> vector<16x128xf32>
    %c1_37 = arith.constant 1 : index
    %c0_38 = arith.constant 0 : index
    %c0_39 = arith.constant 0 : index
    %83 = vector.load %arg6[%c1_37, %c0_38, %c0_39] : memref<3x128x128xf32, #tpu.memory_space<vmem>>, vector<1x128x128xf32>
    %84 = vector.shape_cast %83 : vector<1x128x128xf32> to vector<128x128xf32>
    %cst_40 = arith.constant dense<0.000000e+00> : vector<16x128xf32>
    %85 = tpu.matmul %72, %84, %cst_40 {dimension_numbers = #tpu.dot_dimension_numbers<[1], [0], [0], [1], [0, 0, 1, 1], [], []>} : vector<16x128xf32>, vector<128x128xf32>, vector<16x128xf32> -> vector<16x128xf32>
    %86 = arith.addf %82, %85 : vector<16x128xf32>
    %c15_i32_41 = arith.constant 15 : i32
    %87 = tpu.dynamic_rotate %72 by %c15_i32_41 dim 0 : vector<16x128xf32>, i32 -> vector<16x128xf32>
    %c7_i32_42 = arith.constant 7 : i32
    %88 = vector.broadcast %c7_i32_42 : i32 to vector<16x1xi32>
    %89 = arith.cmpi slt, %16, %88 : vector<16x1xi32>
    %cst_43 = arith.constant 0.000000e+00 : f32
    %90 = vector.broadcast %cst_43 : f32 to vector<16x128xf32>
    %91 = vector.shape_cast %89 : vector<16x1xi1> to vector<16x1xi1>
    %92 = vector.broadcast %91 : vector<16x1xi1> to vector<16x128xi1>
    %93 = arith.select %92, %87, %90 : vector<16x128xi1>, vector<16x128xf32>
    %c2_44 = arith.constant 2 : index
    %c0_45 = arith.constant 0 : index
    %c0_46 = arith.constant 0 : index
    %94 = vector.load %arg6[%c2_44, %c0_45, %c0_46] : memref<3x128x128xf32, #tpu.memory_space<vmem>>, vector<1x128x128xf32>
    %95 = vector.shape_cast %94 : vector<1x128x128xf32> to vector<128x128xf32>
    %cst_47 = arith.constant dense<0.000000e+00> : vector<16x128xf32>
    %96 = tpu.matmul %93, %95, %cst_47 {dimension_numbers = #tpu.dot_dimension_numbers<[1], [0], [0], [1], [0, 0, 1, 1], [], []>} : vector<16x128xf32>, vector<128x128xf32>, vector<16x128xf32> -> vector<16x128xf32>
    %97 = arith.addf %86, %96 : vector<16x128xf32>
    %c0_48 = arith.constant 0 : index
    %c0_49 = arith.constant 0 : index
    %98 = vector.load %arg7[%c0_48, %c0_49] : memref<1x128xf32, #tpu.memory_space<vmem>>, vector<1x128xf32>
    %99 = vector.broadcast %98 : vector<1x128xf32> to vector<16x128xf32>
    %100 = arith.addf %97, %99 : vector<16x128xf32>
    %cst_50 = arith.constant dense<0.000000e+00> : vector<16xf32>
    %101 = vector.multi_reduction <add>, %100, %cst_50 [1] : vector<16x128xf32> to vector<16xf32>
    %102 = vector.shape_cast %101 : vector<16xf32> to vector<16x1xf32>
    %cst_51 = arith.constant 3.125000e-02 : f32
    %103 = vector.broadcast %cst_51 : f32 to vector<16x1xf32>
    %104 = arith.mulf %102, %103 : vector<16x1xf32>
    %105 = arith.mulf %100, %100 : vector<16x128xf32>
    %cst_52 = arith.constant dense<0.000000e+00> : vector<16xf32>
    %106 = vector.multi_reduction <add>, %105, %cst_52 [1] : vector<16x128xf32> to vector<16xf32>
    %107 = vector.shape_cast %106 : vector<16xf32> to vector<16x1xf32>
    %cst_53 = arith.constant 3.125000e-02 : f32
    %108 = vector.broadcast %cst_53 : f32 to vector<16x1xf32>
    %109 = arith.mulf %107, %108 : vector<16x1xf32>
    %110 = vector.broadcast %104 : vector<16x1xf32> to vector<16x128xf32>
    %111 = arith.subf %100, %110 : vector<16x128xf32>
    %112 = arith.mulf %104, %104 : vector<16x1xf32>
    %113 = arith.subf %109, %112 : vector<16x1xf32>
    %cst_54 = arith.constant 9.99999974E-6 : f32
    %114 = vector.broadcast %cst_54 : f32 to vector<16x1xf32>
    %115 = arith.addf %113, %114 : vector<16x1xf32>
    %116 = math.rsqrt %115 : vector<16x1xf32>
    %117 = vector.broadcast %116 : vector<16x1xf32> to vector<16x128xf32>
    %118 = arith.mulf %111, %117 : vector<16x128xf32>
    %c0_55 = arith.constant 0 : index
    %c0_56 = arith.constant 0 : index
    %119 = vector.load %arg8[%c0_55, %c0_56] : memref<1x128xf32, #tpu.memory_space<vmem>>, vector<1x128xf32>
    %120 = vector.broadcast %119 : vector<1x128xf32> to vector<16x128xf32>
    %121 = arith.mulf %118, %120 : vector<16x128xf32>
    %c0_57 = arith.constant 0 : index
    %c0_58 = arith.constant 0 : index
    %122 = vector.load %arg9[%c0_57, %c0_58] : memref<1x128xf32, #tpu.memory_space<vmem>>, vector<1x128xf32>
    %123 = vector.broadcast %122 : vector<1x128xf32> to vector<16x128xf32>
    %124 = arith.addf %121, %123 : vector<16x128xf32>
    %cst_59 = arith.constant 0.000000e+00 : f32
    %125 = vector.broadcast %cst_59 : f32 to vector<16x128xf32>
    %126 = arith.maximumf %124, %125 : vector<16x128xf32>
    %c0_60 = arith.constant 0 : index
    %c0_61 = arith.constant 0 : index
    %127 = vector.load %arg10[%c0_60, %c0_61] : memref<1x128xf32, #tpu.memory_space<vmem>>, vector<1x128xf32>
    %128 = vector.broadcast %127 : vector<1x128xf32> to vector<16x128xf32>
    %129 = arith.mulf %126, %128 : vector<16x128xf32>
    %130 = vector.shape_cast %129 : vector<16x128xf32> to vector<2x8x128xf32>
    %cst_62 = arith.constant dense<0.000000e+00> : vector<2x8xf32>
    %131 = vector.multi_reduction <add>, %130, %cst_62 [2] : vector<2x8x128xf32> to vector<2x8xf32>
    %c0_63 = arith.constant 0 : index
    %c0_64 = arith.constant 0 : index
    %132 = vector.load %arg11[%c0_63, %c0_64] : memref<1x1xf32, #tpu.memory_space<vmem>>, vector<1x1xf32>
    %133 = vector.broadcast %132 : vector<1x1xf32> to vector<2x8xf32>
    %134 = arith.addf %131, %133 : vector<2x8xf32>
    %cst_65 = arith.constant 0.000000e+00 : f32
    %135 = vector.broadcast %cst_65 : f32 to vector<2x8xf32>
    %136 = arith.maximumf %134, %135 : vector<2x8xf32>
    %c0_66 = arith.constant 0 : index
    %c0_67 = arith.constant 0 : index
    %c0_68 = arith.constant 0 : index
    %137 = vector.load %arg12[%c0_66, %c0_67, %c0_68] : memref<2x1x8xf32, #tpu.memory_space<vmem>>, vector<2x1x8xf32>
    %138 = vector.shape_cast %137 : vector<2x1x8xf32> to vector<2x8xf32>
    %139 = vector.shape_cast %136 : vector<2x8xf32> to vector<2x1x8xf32>
    tpu.vector_store %arg12[%c0_66, %c0_67, %c0_68], %139 {strides = array<i32>} : memref<2x1x8xf32, #tpu.memory_space<vmem>>, vector<2x1x8xf32>,
    return
  }
  func.func @transform_0(%arg0: i32) -> (i32, i32, i32) {
    %c0_i32 = arith.constant 0 : i32
    %c0_i32_0 = arith.constant 0 : i32
    %c0_i32_1 = arith.constant 0 : i32
    return %arg0, %c0_i32, %c0_i32_0 : i32, i32, i32
  }
  func.func @transform_1(%arg0: i32) -> (i32, i32, i32) {
    %c0_i32 = arith.constant 0 : i32
    %c0_i32_0 = arith.constant 0 : i32
    %c0_i32_1 = arith.constant 0 : i32
    %c0_i32_2 = arith.constant 0 : i32
    return %c0_i32, %c0_i32_0, %c0_i32_1 : i32, i32, i32
  }
  func.func @transform_2(%arg0: i32) -> (i32, i32) {
    %c0_i32 = arith.constant 0 : i32
    %c0_i32_0 = arith.constant 0 : i32
    %c0_i32_1 = arith.constant 0 : i32
    return %c0_i32, %c0_i32_0 : i32, i32
  }
  func.func @transform_3(%arg0: i32) -> (i32, i32) {
    %c0_i32 = arith.constant 0 : i32
    %c0_i32_0 = arith.constant 0 : i32
    %c0_i32_1 = arith.constant 0 : i32
    return %c0_i32, %c0_i32_0 : i32, i32
  }
  func.func @transform_4(%arg0: i32) -> (i32, i32) {
    %c0_i32 = arith.constant 0 : i32
    %c0_i32_0 = arith.constant 0 : i32
    %c0_i32_1 = arith.constant 0 : i32
    return %c0_i32, %c0_i32_0 : i32, i32
  }
  func.func @transform_5(%arg0: i32) -> (i32, i32, i32) {
    %c0_i32 = arith.constant 0 : i32
    %c0_i32_0 = arith.constant 0 : i32
    %c0_i32_1 = arith.constant 0 : i32
    %c0_i32_2 = arith.constant 0 : i32
    return %c0_i32, %c0_i32_0, %c0_i32_1 : i32, i32, i32
  }
  func.func @transform_6(%arg0: i32) -> (i32, i32) {
    %c0_i32 = arith.constant 0 : i32
    %c0_i32_0 = arith.constant 0 : i32
    %c0_i32_1 = arith.constant 0 : i32
    return %c0_i32, %c0_i32_0 : i32, i32
  }
  func.func @transform_7(%arg0: i32) -> (i32, i32) {
    %c0_i32 = arith.constant 0 : i32
    %c0_i32_0 = arith.constant 0 : i32
    %c0_i32_1 = arith.constant 0 : i32
    return %c0_i32, %c0_i32_0 : i32, i32
  }
  func.func @transform_8(%arg0: i32) -> (i32, i32) {
    %c0_i32 = arith.constant 0 : i32
    %c0_i32_0 = arith.constant 0 : i32
    %c0_i32_1 = arith.constant 0 : i32
    return %c0_i32, %c0_i32_0 : i32, i32
  }
  func.func @transform_9(%arg0: i32) -> (i32, i32) {
    %c0_i32 = arith.constant 0 : i32
    %c0_i32_0 = arith.constant 0 : i32
    %c0_i32_1 = arith.constant 0 : i32
    return %c0_i32, %c0_i32_0 : i32, i32
  }
  func.func @transform_10(%arg0: i32) -> (i32, i32) {
    %c0_i32 = arith.constant 0 : i32
    %c0_i32_0 = arith.constant 0 : i32
    %c0_i32_1 = arith.constant 0 : i32
    return %c0_i32, %c0_i32_0 : i32, i32
  }
  func.func @transform_11(%arg0: i32) -> (i32, i32, i32) {
    %c0_i32 = arith.constant 0 : i32
    %c0_i32_0 = arith.constant 0 : i32
    %c0_i32_1 = arith.constant 0 : i32
    return %arg0, %c0_i32, %c0_i32_0 : i32, i32, i32
  }
}

</mosaic_0001>

<bundles_post_ra>
// kernel: tpu_custom_call.1
= control target key start
LH: loop header
LB: loop body
LE: loop exit
PB: predicated region body
PF: predicated region fallthrough
CT: control target
= control target key end

     0   :  { %s1375_s0 = inlined_call_operand.hbm [shape: f32[2,8,32], index: 0, kind: input, shape index: {}]   ;;  %s1376_s1 = inlined_call_operand.hbm [shape: f32[3,32,128], index: 1, kind: input, shape index: {}]   ;;  %s1377_s2 = inlined_call_operand.vmem [shape: f32[1,128], index: 2, kind: input, shape index: {}]   ;;  %s1378_s3 = inlined_call_operand.vmem [shape: f32[1,128], index: 3, kind: input, shape index: {}]   ;;  %s1379_s4 = inlined_call_operand.vmem [shape: f32[1,128], index: 4, kind: input, shape index: {}]   ;;  %s1380_s5 = inlined_call_operand.hbm [shape: f32[3,128,128], index: 5, kind: input, shape index: {}]   ;;  %s1381_s6 = inlined_call_operand.vmem [shape: f32[1,128], index: 6, kind: input, shape index: {}]   ;;  %s1382_s7 = inlined_call_operand.vmem [shape: f32[1,128], index: 7, kind: input, shape index: {}]   ;;  %s1383_s8 = inlined_call_operand.vmem [shape: f32[1,128], index: 8, kind: input, shape index: {}]   ;;  %s1384_s9 = inlined_call_operand.vmem [shape: f32[1,128], index: 9, kind: input, shape index: {}]   ;;  %s1385_s10 = inlined_call_operand.<no memory space> [shape: f32[1,1], index: 10, kind: input, shape index: {}]   ;;  %s1386_s11 = inlined_call_operand.hbm [shape: f32[2,1,8], index: 11, kind: output, shape index: {}]  }
   0x1   :  { %v16_v0 = vstv %s1385_s10 }
   0x2   :  { %17 = vst [vmem:[#allocation3] sm:$0x1] %v16_v0 }
   0x3   :  { %18 = vsyncpa [#allocation5], 0 }
   0x4   :  { %19 = vsyncpa [#allocation8], 0 }
   0x5   :  { %20 = vsyncpa [#allocation6], 0  ;;  %s1190_s19 = smov [#allocation7]   ;;  %s1191_s21 = smov [#allocation4]  }
   0x6   :  { %s38_s20 = sshll.u32 %s1190_s19, 4  ;;  %s26_s22 = sshll.u32 %s1191_s21, 4  ;;  %s39_s20 = int_to_ptr.vmem [resolvable:$true] %s38_s20  ;;  %s27_s22 = int_to_ptr.vmem [resolvable:$true] %s26_s22 }
   0x7   :  { %s1112_s23 = scalar_lea.vmem %s39_s20, 1536  ;;  %p1117_p1 = scmp.lt.s32.totalorder %s39_s20, %s39_s20 }
   0x8   :  { %p1113_p0 = scmp.ne.s32.totalorder %s39_s20, %s1112_s23  ;;  %p1118_p2 = scmp.lt.s32.totalorder %s1112_s23, %s1112_s23 }
   0xa   :  { %p1119_p3 = por %p1118_p2, %p1117_p1 }
   0xc   :  { %p1120_p4 = pnand %p1119_p3, %p1113_p0 }
   0xe   :  { %1123 = shalt.err (!%p1120_p4)
}
   0xf   :  { %s1192_s24 = smov 128   ;;  %s1193_s25 = smov 8  }
  0x10   :  { %44 = dma.hbm_to_vmem [thread:$0]  %s1376_s1, 1536, %s39_s20, [#allocation8], %s1192_s24, %s1192_s24, %s1193_s25  }
  0x11   :  { %s1132_s27 = scalar_lea.vmem %s27_s22, 256  ;;  %p1137_p6 = scmp.lt.s32.totalorder %s27_s22, %s27_s22 }
  0x12   :  { %p1133_p5 = scmp.ne.s32.totalorder %s27_s22, %s1132_s27  ;;  %p1138_p7 = scmp.lt.s32.totalorder %s1132_s27, %s1132_s27 }
  0x14   :  { %p1139_p8 = por %p1138_p7, %p1137_p6 }
  0x16   :  { %p1140_p9 = pnand %p1139_p8, %p1133_p5 }
  0x18   :  { %1143 = shalt.err (!%p1140_p9)
}
  0x19   :  { %32 = dma.hbm_to_vmem [thread:$0]  %s1375_s0, 256, %s27_s22, [#allocation5], %s1192_s24, %s1192_s24, %s1193_s25  }
  0x1a   :  { %s1194_s30 = smov [#allocation9]  }
  0x1b   :  { %s56_s12 = sshll.u32 %s1194_s30, 4  ;;  %s57_s12 = int_to_ptr.vmem [resolvable:$true] %s56_s12 }
  0x1c   :  { %s1152_s13 = scalar_lea.vmem %s57_s12, 6144  ;;  %p1157_p11 = scmp.lt.s32.totalorder %s57_s12, %s57_s12 }
  0x1d   :  { %p1153_p10 = scmp.ne.s32.totalorder %s57_s12, %s1152_s13  ;;  %p1158_p12 = scmp.lt.s32.totalorder %s1152_s13, %s1152_s13 }
  0x1f   :  { %p1159_p13 = por %p1158_p12, %p1157_p11 }
  0x21   :  { %p1160_p0 = pnand %p1159_p13, %p1153_p10 }
  0x23   :  { %1163 = shalt.err (!%p1160_p0)
}
  0x24   :  { %62 = dma.hbm_to_vmem [thread:$0]  %s1380_s5, 6144, %s57_s12, [#allocation8], %s1192_s24, %s1192_s24, %s1193_s25  }
  0x25   :  { %1184 = dma.done.wait [#allocation5], 256  }
  0x26   :  { %1185 = vsyncadd [#allocation5], 4294967040 }
  0x27   :  { %1186 = dma.done.wait [#allocation8], 7680  }
  0x28   :  { %1187 = vsyncadd [#allocation8], 4294959616  ;;  %v82_v1 = vlaneseq  ;;  %vm133_vm0 = vcmask 261120   ;;  %v132_v3 = vld [vmem:[#allocation7 + $0x38] sm:$0xff]  ;;  %v131_v4 = vld [vmem:[#allocation7 + $0x30] sm:$0xff]  ;;  %vm837_vm7 = vcmask 57344  }
  0x29   :  { %948 = vmatprep.subr.mxu0 %v132_v3  ;;  %v109_v6 = vld [vmem:[#allocation4] sm:$0xff]  ;;  %v110_v7 = vld [vmem:[#allocation4 + $0x8] sm:$0xff]  ;;  %v130_v8 = vld [vmem:[#allocation7 + $0x28] sm:$0xff] }
  0x2a   :  { %v1272_v2 = vshrl.u32 %v82_v1, 7  ;;  %949 = vmatpush3.msra.mxu0 %v132_v3  ;;  %v111_v9 = vrot.slane %v109_v6, 7  ;;  %956 = vmatprep.mubr.msk.f32.mxu0 %vm133_vm0, %v109_v6  ;;  %v112_v10 = vrot.slane %v110_v7, 7  ;;  %v129_v12 = vld [vmem:[#allocation7 + $0x20] sm:$0xff]  ;;  %v127_v15 = vld [vmem:[#allocation7 + $0x18] sm:$0xff]  ;;  %v296_v18 = vrot.slane %v109_v6, 1 }
  0x2b   :  { %950 = vmatprep.subr.mxu0 %v131_v4  ;;  %v297_v19 = vrot.slane %v110_v7, 1  ;;  %v126_v20 = vld [vmem:[#allocation7 + $0x10] sm:$0xff]  ;;  %v125_v21 = vld [vmem:[#allocation7 + $0x8] sm:$0xff]  ;;  %v124_v24 = vld [vmem:[#allocation7] sm:$0xff] }
  0x2c   :  { %v89_v5 = vand.u32 7, %v1272_v2  ;;  %vm113_vm1 = vcmp.lt.s32.totalorder %v1272_v2, 1  ;;  %v84_v11 = vadd.s32 8, %v1272_v2  ;;  %951 = vmatpush3.msra.mxu0 %v131_v4  ;;  %vm298_vm3 = vcmp.lt.s32.totalorder %v1272_v2, 7  ;;  %v313_v28 = vld [vmem:[#allocation7 + $0x58] sm:$0xff]  ;;  %v312_v30 = vld [vmem:[#allocation7 + $0x50] sm:$0xff] }
  0x2d   :  { %v115_v13 = vsel %vm113_vm1, %v112_v10, %v111_v9  ;;  %952 = vmatprep.subr.mxu0 %v130_v8  ;;  %v114_v22 = vsel %vm113_vm1, %v111_v9, %v112_v10  ;;  %v299_v25 = vsel %vm298_vm3, %v296_v18, %v297_v19  ;;  %v311_v31 = vld [vmem:[#allocation7 + $0x48] sm:$0xff]  ;;  %v300_v32 = vsel %vm298_vm3, %v297_v19, %v296_v18  ;;  %v310_v34 = vld [vmem:[#allocation7 + $0x40] sm:$0xff]  ;;  %v490_v51 = vld [vmem:[#allocation9 + $0xf8] sm:$0xff] }
  0x2e   :  { %vm1280_vm2 = vcmp.ge.s32.totalorder %v89_v5, 1  ;;  %953 = vmatpush3.msra.mxu0 %v130_v8  ;;  %v96_v17 = vand.u32 7, %v84_v11  ;;  %vm1297_vm5 = vcmp.lt.s32.totalorder %v89_v5, 7  ;;  %v864_v46 = vld [vmem:[%s1377_s2] ss:$0 sm:$0xff]  ;;  %981 = vmatprep.subr.mxu1 %v490_v51  ;;  %v489_v52 = vld [vmem:[#allocation9 + $0xf0] sm:$0xff] }
  0x2f   :  { %954 = vmatprep.subr.mxu0 %v129_v12  ;;  %v122_v16 = vsel %vm1280_vm2, %v115_v13, 0.0  ;;  %v307_v29 = vsel %vm1297_vm5, %v299_v25, 0.0  ;;  %982 = vmatpush3.msra.mxu1 %v490_v51  ;;  %v488_v53 = vld [vmem:[#allocation9 + $0xe8] sm:$0xff]  ;;  %v473_v54 = vld [vmem:[#allocation9 + $0x78] sm:$0xff]  ;;  %v487_v55 = vld [vmem:[#allocation9 + $0xe0] sm:$0xff] }
  0x30   :  { %955 = vmatpush3.msra.mxu0 %v129_v12  ;;  %vm1291_vm4 = vcmp.ge.s32.totalorder %v96_v17, 1  ;;  %vm1309_vm6 = vcmp.lt.s32.totalorder %v96_v17, 7  ;;  %983 = vmatprep.subr.mxu1 %v489_v52  ;;  %v472_v56 = vld [vmem:[#allocation9 + $0x70] sm:$0xff]  ;;  %v486_v57 = vld [vmem:[#allocation9 + $0xd8] sm:$0xff]  ;;  %v471_v58 = vld [vmem:[#allocation9 + $0x68] sm:$0xff] }
  0x31   :  { %957 = vmatmul.mubr.msk.f32.vlgmr.msra.gmra.mxu0 %vm133_vm0, %v110_v7  ;;  %959 = vmatprep.subr.mxu0 %v127_v15  ;;  %v123_v27 = vsel %vm1291_vm4, %v114_v22, 0.0  ;;  %v308_v35 = vsel %vm1309_vm6, %v300_v32, 0.0  ;;  %v485_v59 = vld [vmem:[#allocation9 + $0xd0] sm:$0xff]  ;;  %v470_v60 = vld [vmem:[#allocation9 + $0x60] sm:$0xff]  ;;  %v484_v61 = vld [vmem:[#allocation9 + $0xc8] sm:$0xff] }
  0x32   :  { %960 = vmatpush3.msra.mxu0 %v127_v15  ;;  %967 = vmatprep.mubr.msk.f32.mxu0 %vm133_vm0, %v122_v16  ;;  %v469_v62 = vld [vmem:[#allocation9 + $0x58] sm:$0xff]  ;;  %v483_v63 = vld [vmem:[#allocation9 + $0xc0] sm:$0xff]  ;;  %v468_v0 = vld [vmem:[#allocation9 + $0x50] sm:$0xff] }
  0x33   :  { %961 = vmatprep.subr.mxu0 %v126_v20  ;;  %984 = vmatpush3.msra.mxu1 %v489_v52  ;;  %v482_v3 = vld [vmem:[#allocation9 + $0xb8] sm:$0xff]  ;;  %v467_v4 = vld [vmem:[#allocation9 + $0x48] sm:$0xff]  ;;  %v481_v5 = vld [vmem:[#allocation9 + $0xb0] sm:$0xff] }
  0x34   :  { %962 = vmatpush3.msra.mxu0 %v126_v20  ;;  %985 = vmatprep.subr.mxu1 %v488_v53  ;;  %v466_v6 = vld [vmem:[#allocation9 + $0x40] sm:$0xff]  ;;  %v480_v7 = vld [vmem:[#allocation9 + $0xa8] sm:$0xff]  ;;  %v465_v8 = vld [vmem:[#allocation9 + $0x38] sm:$0xff] }
  0x35   :  { %963 = vmatprep.subr.mxu0 %v125_v21  ;;  %986 = vmatpush3.msra.mxu1 %v488_v53  ;;  %v479_v9 = vld [vmem:[#allocation9 + $0xa0] sm:$0xff]  ;;  %v464_v10 = vld [vmem:[#allocation9 + $0x30] sm:$0xff]  ;;  %v478_v11 = vld [vmem:[#allocation9 + $0x98] sm:$0xff] }
  0x36   :  { %964 = vmatpush3.msra.mxu0 %v125_v21  ;;  %987 = vmatprep.subr.mxu1 %v487_v55  ;;  %v463_v12 = vld [vmem:[#allocation9 + $0x28] sm:$0xff]  ;;  %v477_v13 = vld [vmem:[#allocation9 + $0x90] sm:$0xff]  ;;  %v462_v15 = vld [vmem:[#allocation9 + $0x20] sm:$0xff] }
  0x37   :  { %965 = vmatprep.subr.mxu0 %v124_v24  ;;  %988 = vmatpush3.msra.mxu1 %v487_v55  ;;  %v476_v16 = vld [vmem:[#allocation9 + $0x88] sm:$0xff]  ;;  %v461_v17 = vld [vmem:[#allocation9 + $0x18] sm:$0xff]  ;;  %v475_v18 = vld [vmem:[#allocation9 + $0x80] sm:$0xff] }
  0x38   :  { %966 = vmatpush3.msra.mxu0 %v124_v24  ;;  %989 = vmatprep.subr.mxu1 %v486_v57  ;;  %v460_v19 = vld [vmem:[#allocation9 + $0x10] sm:$0xff]  ;;  %v663_v20 = vld [vmem:[#allocation9 + $0x178] sm:$0xff]  ;;  %v459_v21 = vld [vmem:[#allocation9 + $0x8] sm:$0xff] }
  0x39   :  { %968 = vmatmul.mubr.msk.f32.vlgmr.msra.gmra.mxu0 %vm133_vm0, %v123_v27  ;;  %970 = vmatprep.subr.mxu0 %v313_v28  ;;  %v458_v22 = vld [vmem:[#allocation9] sm:$0xff]  ;;  %v662_v55 = vld [vmem:[#allocation9 + $0x170] sm:$0xff]  ;;  %v653_v23 = vld [vmem:[#allocation9 + $0x128] sm:$0xff] }
  0x3a   :  { %971 = vmatpush3.msra.mxu0 %v313_v28  ;;  %978 = vmatprep.mubr.msk.f32.mxu0 %vm133_vm0, %v307_v29  ;;  %v656_v14 = vld [vmem:[#allocation9 + $0x140] sm:$0xff]  ;;  %v654_v26 = vld [vmem:[#allocation9 + $0x130] sm:$0xff] }
  0x3b   :  { %972 = vmatprep.subr.mxu0 %v312_v30  ;;  %990 = vmatpush3.msra.mxu1 %v486_v57 }
  0x3c   :  { %973 = vmatpush3.msra.mxu0 %v312_v30  ;;  %991 = vmatprep.subr.mxu1 %v485_v59 }
  0x3d   :  { %974 = vmatprep.subr.mxu0 %v311_v31  ;;  %992 = vmatpush3.msra.mxu1 %v485_v59 }
  0x3e   :  { %975 = vmatpush3.msra.mxu0 %v311_v31  ;;  %993 = vmatprep.subr.mxu1 %v484_v61 }
  0x3f   :  { %976 = vmatprep.subr.mxu0 %v310_v34  ;;  %994 = vmatpush3.msra.mxu1 %v484_v61 }
  0x40   :  { %977 = vmatpush3.msra.mxu0 %v310_v34  ;;  %995 = vmatprep.subr.mxu1 %v483_v63 }
  0x41   :  { %979 = vmatmul.mubr.msk.f32.vlgmr.msra.gmra.mxu0 %vm133_vm0, %v308_v35  ;;  %1016 = vmatprep.subr.mxu0 %v473_v54 }
  0x42   :  { %1017 = vmatpush3.msra.mxu0 %v473_v54  ;;  %996 = vmatpush3.msra.mxu1 %v483_v63  ;;  %v660_v63 = vld [vmem:[#allocation9 + $0x160] sm:$0xff] }
  0x43   :  { %1018 = vmatprep.subr.mxu0 %v472_v56  ;;  %997 = vmatprep.subr.mxu1 %v482_v3 }
  0x44   :  { %1019 = vmatpush3.msra.mxu0 %v472_v56  ;;  %998 = vmatpush3.msra.mxu1 %v482_v3  ;;  %v658_v3 = vld [vmem:[#allocation9 + $0x150] sm:$0xff] }
  0x45   :  { %1020 = vmatprep.subr.mxu0 %v471_v58  ;;  %999 = vmatprep.subr.mxu1 %v481_v5 }
  0x46   :  { %1021 = vmatpush3.msra.mxu0 %v471_v58  ;;  %1000 = vmatpush3.msra.mxu1 %v481_v5  ;;  %v655_v5 = vld [vmem:[#allocation9 + $0x138] sm:$0xff] }
  0x47   :  { %1022 = vmatprep.subr.mxu0 %v470_v60  ;;  %1001 = vmatprep.subr.mxu1 %v480_v7 }
  0x48   :  { %1023 = vmatpush3.msra.mxu0 %v470_v60  ;;  %1002 = vmatpush3.msra.mxu1 %v480_v7  ;;  %v651_v7 = vld [vmem:[#allocation9 + $0x118] sm:$0xff] }
  0x49   :  { %1024 = vmatprep.subr.mxu0 %v469_v62  ;;  %1003 = vmatprep.subr.mxu1 %v479_v9 }
  0x4a   :  { %1025 = vmatpush3.msra.mxu0 %v469_v62  ;;  %1004 = vmatpush3.msra.mxu1 %v479_v9  ;;  %v649_v9 = vld [vmem:[#allocation9 + $0x108] sm:$0xff] }
  0x4b   :  { %1026 = vmatprep.subr.mxu0 %v468_v0  ;;  %1005 = vmatprep.subr.mxu1 %v478_v11 }
  0x4c   :  { %1027 = vmatpush3.msra.mxu0 %v468_v0  ;;  %1006 = vmatpush3.msra.mxu1 %v478_v11  ;;  %v659_v0 = vld [vmem:[#allocation9 + $0x158] sm:$0xff] }
  0x4d   :  { %1028 = vmatprep.subr.mxu0 %v467_v4  ;;  %1007 = vmatprep.subr.mxu1 %v477_v13 }
  0x4e   :  { %1029 = vmatpush3.msra.mxu0 %v467_v4  ;;  %1008 = vmatpush3.msra.mxu1 %v477_v13  ;;  %v657_v4 = vld [vmem:[#allocation9 + $0x148] sm:$0xff] }
  0x4f   :  { %1030 = vmatprep.subr.mxu0 %v466_v6  ;;  %1009 = vmatprep.subr.mxu1 %v476_v16 }
  0x50   :  { %1031 = vmatpush3.msra.mxu0 %v466_v6  ;;  %1010 = vmatpush3.msra.mxu1 %v476_v16  ;;  %v652_v6 = vld [vmem:[#allocation9 + $0x120] sm:$0xff] }
  0x51   :  { %1032 = vmatprep.subr.mxu0 %v465_v8  ;;  %1011 = vmatprep.subr.mxu1 %v475_v18 }
  0x52   :  { %1033 = vmatpush3.msra.mxu0 %v465_v8  ;;  %1012 = vmatpush3.msra.mxu1 %v475_v18  ;;  %v650_v8 = vld [vmem:[#allocation9 + $0x110] sm:$0xff] }
  0x53   :  { %1034 = vmatprep.subr.mxu0 %v464_v10  ;;  %1051 = vmatprep.subr.mxu1 %v663_v20 }
  0x54   :  { %1035 = vmatpush3.msra.mxu0 %v464_v10  ;;  %v648_v10 = vld [vmem:[#allocation9 + $0x100] sm:$0xff] }
  0x55   :  { %1036 = vmatprep.subr.mxu0 %v463_v12 }
  0x56   :  { %1037 = vmatpush3.msra.mxu0 %v463_v12 }
  0x57   :  { %1038 = vmatprep.subr.mxu0 %v462_v15 }
  0x58   :  { %1039 = vmatpush3.msra.mxu0 %v462_v15 }
  0x59   :  { %1040 = vmatprep.subr.mxu0 %v461_v17 }
  0x5a   :  { %1041 = vmatpush3.msra.mxu0 %v461_v17 }
  0x5b   :  { %1042 = vmatprep.subr.mxu0 %v460_v19 }
  0x5c   :  { %1043 = vmatpush3.msra.mxu0 %v460_v19  ;;  %v871_v19 = vld [vmem:[%s1381_s6] ss:$0 sm:$0xff] }
  0x5d   :  { %1044 = vmatprep.subr.mxu0 %v459_v21 }
  0x5e   :  { %1045 = vmatpush3.msra.mxu0 %v459_v21 }
  0x5f   :  { %1046 = vmatprep.subr.mxu0 %v458_v22 }
  0x60   :  { %1047 = vmatpush3.msra.mxu0 %v458_v22 }
  0xf1   :  { %v958_v36 = vpop.f32.mrf.mxu0 }
  0xf3   :  { %v206_v37 = vpop.f32.mrf.mxu0 }
  0xf9   :  { %v969_v38 = vpop.f32.mrf.mxu0 }
  0xfa   :  { %v293_v41 = vadd.f32 %v969_v38, %v958_v36 }
  0xfb   :  { %v287_v39 = vpop.f32.mrf.mxu0 }
  0xfc   :  { %v288_v42 = vadd.f32 %v287_v39, %v206_v37 }
 0x101   :  { %v980_v40 = vpop.f32.mrf.mxu0 }
 0x102   :  { %v396_v44 = vadd.f32 %v980_v40, %v293_v41 }
 0x103   :  { %v386_v43 = vpop.f32.mrf.mxu0 }
 0x104   :  { %v395_v45 = vadd.f32 %v386_v43, %v288_v42  ;;  %v1321_v48 = vadd.f32 %v864_v46, %v396_v44  ;;  %v865_v42 = vld [vmem:[%s1378_s3] ss:$0 sm:$0xff] }
 0x105   :  { %v866_v44 = vld [vmem:[%s1379_s4] ss:$0 sm:$0xff] }
 0x106   :  { %v1319_v47 = vadd.f32 %v864_v46, %v395_v45  ;;  %v413_v50 = vmul.f32 %v1321_v48, %v1321_v48 }
 0x108   :  { %406 = vadd.xlane.f32.xlu0 %v1319_v47  ;;  %v412_v49 = vmul.f32 %v1319_v47, %v1319_v47 }
 0x10a   :  { %414 = vadd.xlane.f32.xlu1 %v412_v49 }
 0x10c   :  { %408 = vadd.xlane.f32.xlu0 %v1321_v48 }
 0x10e   :  { %416 = vadd.xlane.f32.xlu1 %v413_v50 }
 0x191   :  { %v407_v24 = vpop.xlane.xlu0 %406 }
 0x192   :  { %v410_v25 = vmul.f32 0.03125, %v407_v24 }
 0x193   :  { %v415_v27 = vpop.xlane.xlu1 %414 }
 0x194   :  { %v422_v28 = vmul.f32 %v410_v25, %v410_v25  ;;  %v418_v29 = vmul.f32 0.03125, %v415_v27  ;;  %v420_v40 = vsub.f32 %v1319_v47, %v410_v25 }
 0x195   :  { %v409_v30 = vpop.xlane.xlu0 %408 }
 0x196   :  { %v424_v31 = vsub.f32 %v418_v29, %v422_v28  ;;  %v411_v32 = vmul.f32 0.03125, %v409_v30  ;;  %v1195_v29 = vmov 0  }
 0x197   :  { %v417_v34 = vpop.xlane.xlu1 %416  ;;  %1095 = vset.pattern.permute.xlu0 %v1195_v29 }
 0x198   :  { %v426_v35 = vadd.f32 1e-05, %v424_v31  ;;  %v423_v36 = vmul.f32 %v411_v32, %v411_v32  ;;  %v419_v37 = vmul.f32 0.03125, %v417_v34  ;;  %v421_v45 = vsub.f32 %v1321_v48, %v411_v32  ;;  %v661_v48 = vld [vmem:[#allocation9 + $0x168] sm:$0xff] }
 0x19a   :  { %1096 = vrsqrt.f32 %v426_v35  ;;  %v425_v38 = vsub.f32 %v419_v37, %v423_v36 }
 0x19c   :  { %v427_v39 = vadd.f32 1e-05, %v425_v38 }
 0x19e   :  { %1098 = vrsqrt.f32 %v427_v39 }
 0x1a7   :  { %v1097_v41 = vpop.eup %1096 }
 0x1a8   :  { %v430_v43 = vmul.f32 %v1097_v41, %v420_v40 }
 0x1aa   :  { %v439_v46 = vmul.f32 %v865_v42, %v430_v43 }
 0x1ab   :  { %v1099_v49 = vpop.eup %1098 }
 0x1ac   :  { %v448_v50 = vadd.f32 %v866_v44, %v439_v46  ;;  %v431_v51 = vmul.f32 %v1099_v49, %v421_v45  ;;  %v872_v49 = vld [vmem:[%s1382_s7] ss:$0 sm:$0xff]  ;;  %s1196_s7 = smov [#allocation10]  }
 0x1ae   :  { %v1337_v52 = vmax.f32 %v448_v50, 0.0  ;;  %v440_v53 = vmul.f32 %v865_v42, %v431_v51 }
 0x1b0   :  { %1013 = vmatprep.mubr.f32.mxu1 %v1337_v52  ;;  %v449_v47 = vadd.f32 %v866_v44, %v440_v53  ;;  %v452_v56 = vrot.slane %v1337_v52, 7  ;;  %v641_v58 = vrot.slane %v1337_v52, 1  ;;  %v873_v53 = vld [vmem:[%s1383_s8] ss:$0 sm:$0xff]  ;;  %s845_s8 = sshll.u32 %s1196_s7, 4  ;;  %s846_s8 = int_to_ptr.vmem [resolvable:$true] %s845_s8 }
 0x1b1   :  { %p1169_p2 = scmp.lt.s32.totalorder %s846_s8, %s846_s8 }
 0x1b2   :  { %v451_v54 = vmax.f32 %v449_v47, 0.0 }
 0x1b4   :  { %1014 = vmatmul.mubr.f32.vlgmr.msra.gmra.mxu1 %v451_v54  ;;  %v453_v57 = vrot.slane %v451_v54, 7  ;;  %v642_v59 = vrot.slane %v451_v54, 1 }
 0x1b5   :  { %1052 = vmatpush3.msra.mxu1 %v663_v20 }
 0x1b6   :  { %1053 = vmatprep.subr.mxu1 %v662_v55  ;;  %v455_v60 = vsel %vm113_vm1, %v453_v57, %v452_v56  ;;  %v643_v61 = vsel %vm298_vm3, %v641_v58, %v642_v59  ;;  %v454_v62 = vsel %vm113_vm1, %v452_v56, %v453_v57  ;;  %v644_v11 = vsel %vm298_vm3, %v642_v59, %v641_v58  ;;  %v874_v57 = vld [vmem:[%s1384_s9] ss:$0 sm:$0xff]  ;;  %s1164_s9 = scalar_lea.vmem %s846_s8, 32 }
 0x1b7   :  { %1054 = vmatpush3.msra.mxu1 %v662_v55  ;;  %1048 = vmatprep.mubr.msk.f32.mxu0 %vm1280_vm2, %v455_v60  ;;  %p1165_p1 = scmp.ne.s32.totalorder %s846_s8, %s1164_s9  ;;  %p1170_p3 = scmp.lt.s32.totalorder %s1164_s9, %s1164_s9 }
 0x1b8   :  { %1055 = vmatprep.subr.mxu1 %v661_v48  ;;  %1083 = vmatprep.mubr.msk.f32.mxu1 %vm1297_vm5, %v643_v61 }
 0x1b9   :  { %1049 = vmatmul.mubr.msk.f32.vlgmr.msra.gmra.mxu0 %vm1291_vm4, %v454_v62  ;;  %1056 = vmatpush3.msra.mxu1 %v661_v48  ;;  %v875_v62 = vld [vmem:[#allocation3] ss:$0 sm:$0xff]  ;;  %p1171_p4 = por %p1170_p3, %p1169_p2 }
 0x1ba   :  { %1057 = vmatprep.subr.mxu1 %v660_v63 }
 0x1bb   :  { %1058 = vmatpush3.msra.mxu1 %v660_v63  ;;  %p1172_p5 = pnand %p1171_p4, %p1165_p1 }
 0x1bc   :  { %1059 = vmatprep.subr.mxu1 %v659_v0 }
 0x1bd   :  { %1060 = vmatpush3.msra.mxu1 %v659_v0  ;;  %v826_v0 = vand.u32 127, %v82_v1 }
 0x1be   :  { %1061 = vmatprep.subr.mxu1 %v658_v3 }
 0x1bf   :  { %1062 = vmatpush3.msra.mxu1 %v658_v3 }
 0x1c0   :  { %1063 = vmatprep.subr.mxu1 %v657_v4 }
 0x1c1   :  { %1064 = vmatpush3.msra.mxu1 %v657_v4 }
 0x1c2   :  { %1065 = vmatprep.subr.mxu1 %v656_v14 }
 0x1c3   :  { %1066 = vmatpush3.msra.mxu1 %v656_v14  ;;  %v829_v14 = vsub.s32 %v826_v0, %v1272_v2 }
 0x1c4   :  { %1067 = vmatprep.subr.mxu1 %v655_v5 }
 0x1c5   :  { %1068 = vmatpush3.msra.mxu1 %v655_v5 }
 0x1c6   :  { %1069 = vmatprep.subr.mxu1 %v654_v26 }
 0x1c7   :  { %1070 = vmatpush3.msra.mxu1 %v654_v26 }
 0x1c8   :  { %1071 = vmatprep.subr.mxu1 %v653_v23 }
 0x1c9   :  { %1072 = vmatpush3.msra.mxu1 %v653_v23 }
 0x1ca   :  { %1073 = vmatprep.subr.mxu1 %v652_v6 }
 0x1cb   :  { %1074 = vmatpush3.msra.mxu1 %v652_v6 }
 0x1cc   :  { %1075 = vmatprep.subr.mxu1 %v651_v7 }
 0x1cd   :  { %1076 = vmatpush3.msra.mxu1 %v651_v7 }
 0x1ce   :  { %1077 = vmatprep.subr.mxu1 %v650_v8 }
 0x1cf   :  { %1078 = vmatpush3.msra.mxu1 %v650_v8 }
 0x1d0   :  { %1079 = vmatprep.subr.mxu1 %v649_v9 }
 0x1d1   :  { %1080 = vmatpush3.msra.mxu1 %v649_v9 }
 0x1d2   :  { %1081 = vmatprep.subr.mxu1 %v648_v10 }
 0x1d3   :  { %1082 = vmatpush3.msra.mxu1 %v648_v10 }
 0x1d4   :  { %1084 = vmatmul.mubr.msk.f32.vlgmr.msra.gmra.mxu1 %vm1309_vm6, %v644_v11 }
 0x274   :  { %v1015_v12 = vpop.f32.mrf.mxu1 }
 0x276   :  { %v557_v15 = vpop.f32.mrf.mxu1 }
 0x279   :  { %v1050_v13 = vpop.f32.mrf.mxu0 }
 0x27a   :  { %v638_v17 = vadd.f32 %v1050_v13, %v1015_v12 }
 0x27b   :  { %v632_v16 = vpop.f32.mrf.mxu0 }
 0x27c   :  { %v633_v20 = vadd.f32 %v632_v16, %v557_v15 }
 0x294   :  { %v1085_v18 = vpop.f32.mrf.mxu1 }
 0x295   :  { %v740_v21 = vadd.f32 %v1085_v18, %v638_v17 }
 0x296   :  { %v730_v22 = vpop.f32.mrf.mxu1 }
 0x297   :  { %v749_v24 = vadd.f32 %v871_v19, %v740_v21  ;;  %v739_v25 = vadd.f32 %v730_v22, %v633_v20 }
 0x299   :  { %v748_v27 = vadd.f32 %v871_v19, %v739_v25  ;;  %752 = vadd.xlane.f32.xlu1 %v749_v24  ;;  %v757_v33 = vmul.f32 %v749_v24, %v749_v24 }
 0x29b   :  { %750 = vadd.xlane.f32.xlu0 %v748_v27  ;;  %v756_v28 = vmul.f32 %v748_v27, %v748_v27 }
 0x29d   :  { %760 = vadd.xlane.f32.xlu1 %v757_v33 }
 0x29f   :  { %758 = vadd.xlane.f32.xlu0 %v756_v28 }
 0x322   :  { %v753_v30 = vpop.xlane.xlu1 %752 }
 0x323   :  { %v755_v31 = vmul.f32 0.03125, %v753_v30 }
 0x324   :  { %v751_v32 = vpop.xlane.xlu0 %750 }
 0x325   :  { %v754_v34 = vmul.f32 0.03125, %v751_v32  ;;  %v767_v36 = vmul.f32 %v755_v31, %v755_v31  ;;  %v765_v45 = vsub.f32 %v749_v24, %v755_v31 }
 0x326   :  { %v761_v35 = vpop.xlane.xlu1 %760 }
 0x327   :  { %v763_v37 = vmul.f32 0.03125, %v761_v35  ;;  %v766_v39 = vmul.f32 %v754_v34, %v754_v34  ;;  %v764_v50 = vsub.f32 %v748_v27, %v754_v34 }
 0x328   :  { %v759_v38 = vpop.xlane.xlu0 %758 }
 0x329   :  { %v769_v40 = vsub.f32 %v763_v37, %v767_v36  ;;  %v762_v41 = vmul.f32 0.03125, %v759_v38 }
 0x32b   :  { %v771_v42 = vadd.f32 1e-05, %v769_v40  ;;  %v768_v43 = vsub.f32 %v762_v41, %v766_v39 }
 0x32d   :  { %1100 = vrsqrt.f32 %v771_v42  ;;  %v770_v44 = vadd.f32 1e-05, %v768_v43 }
 0x32f   :  { %1102 = vrsqrt.f32 %v770_v44 }
 0x33a   :  { %v1101_v46 = vpop.eup %1100 }
 0x33b   :  { %v775_v51 = vmul.f32 %v1101_v46, %v765_v45 }
 0x33c   :  { %v1103_v52 = vpop.eup %1102 }
 0x33d   :  { %v784_v47 = vmul.f32 %v872_v49, %v775_v51  ;;  %v774_v54 = vmul.f32 %v1103_v52, %v764_v50 }
 0x33f   :  { %v793_v55 = vadd.f32 %v873_v53, %v784_v47  ;;  %v783_v56 = vmul.f32 %v872_v49, %v774_v54 }
 0x341   :  { %v795_v58 = vmax.f32 %v793_v55, 0.0  ;;  %v792_v59 = vadd.f32 %v873_v53, %v783_v56 }
 0x343   :  { %v804_v48 = vmul.f32 %v874_v57, %v795_v58  ;;  %v794_v60 = vmax.f32 %v792_v59, 0.0 }
 0x345   :  { %807 = vadd.xlane.f32.xlu1 %v804_v48  ;;  %v803_v61 = vmul.f32 %v874_v57, %v794_v60 }
 0x347   :  { %805 = vadd.xlane.f32.xlu0 %v803_v61 }
 0x35d   :  { %816 = vperm.xlu0 %1095, %v875_v62  }
 0x3ce   :  { %v808_v3 = vpop.xlane.xlu1 %807 }
 0x3d0   :  { %v806_v63 = vpop.xlane.xlu0 %805 }
 0x3d8   :  { %v817_v4 = vpop.permute.xlu0 %816 }
 0x3d9   :  { %v819_v5 = vadd.f32 %v817_v4, %v806_v63  ;;  %v820_v26 = vadd.f32 %v817_v4, %v808_v3 }
 0x3db   :  { %v821_v23 = vmax.f32 %v819_v5, 0.0  ;;  %v822_v6 = vmax.f32 %v820_v26, 0.0 }
 0x3dd   :  { %v830_v7 = vrot.slane %v821_v23, %v829_v14  ;;  %v834_v8 = vrot.slane %v822_v6, %v829_v14 }
 0x3df   :  { %838 = vst.msk [vmem:[#allocation10] sm:$0x1] %vm837_vm7, %v830_v7  ;;  %839 = vst.msk [vmem:[#allocation10 + $0x1] sm:$0x1] %vm837_vm7, %v834_v8 }
 0x3e0   :  { %1175 = shalt.err (!%p1172_p5)
}
 0x3e1   :  { %s1197_s23 = smov 16   ;;  %s1198_s24 = smov 1  }
 0x3e2   :  { %851 = dma.vmem_to_hbm [thread:$0]  %s846_s8, 32, %s1386_s11, [#allocation6], %s1197_s23, %s1197_s23, %s1198_s24  }
 0x3e3   :  { %1188 = dma.done.wait [#allocation6], 32  }
 0x3e4   :  { %1189 = vsyncadd [#allocation6], 4294967264 }
 0x3e5   :  { %855 = vsyncpa [#allocation5], 1 }
 0x3e6   :  { %856 = vsyncpa [#allocation8], 1 }
 0x3e7   :  { %857 = vsyncpa [#allocation6], 1 }

</bundles_post_ra>
